<compile_context>
chip_gen: v7x
topology: tpu7x:2x2x1
jax: 0.10.0
libtpu: 0.0.40
codegen_flags: <defaults>
</compile_context>

<pallas_src>
import jax
import jax.numpy as jnp
from jax.experimental import pallas as pl
from jax.experimental.pallas import tpu as pltpu


def _round_up(n, m):
    return ((n + m - 1) // m) * m


def _choose_tile(B, max_tb=1024):
    """Pick the batch tile.

    Cost model (row-equivalents): per-grid-step pipeline overhead costs about
    as much as ~256 rows of MXU work, so
        cost(tb) ~= padded_rows + 256 * n_tiles  (+ tb if the grid is odd and
                    >= 2, modelling v7x load imbalance across its 2 TCs).
    Small batches get a single tile padded only to a multiple of 8.
    """
    if B <= 256:
        return max(8, _round_up(B, 8))
    candidates = {256, 512, 1024}
    candidates.add(min(max_tb, _round_up((B + 1) // 2, 8)))  # even 2-way split
    best_tb, best_cost = None, None
    for tb in sorted(candidates, reverse=True):
        Bp = _round_up(B, tb)
        n = Bp // tb
        cost = Bp + 256 * n
        if n >= 2 and n % 2 == 1:
            cost += tb  # one TensorCore gets an extra step on v7x
        if best_cost is None or cost < best_cost:
            best_tb, best_cost = tb, cost
    return best_tb


def _residual_linear_kernel(
    x_ref,        # (TB, F)      bf16
    wcat_ref,     # (F, 384)     bf16   [w1 | ws]
    bcat_ref,     # (1, 384)     f32    [b1 | bs]
    w2_ref,       # (256, 1024)  bf16
    b2_ref,       # (1, 1024)    f32
    w3_ref,       # (1024, 128)  bf16
    b3_ref,       # (1, 128)     f32
    wo_ref,       # (1, 128)     f32    output-head weight as a row
    bo_ref,       # (1, 1)       f32
    o_ref,        # (TB, 1)      f32
):
    x = x_ref[...]

    # Fused fc layer-1 + shortcut: one MXU matmul over the small K=F contraction.
    hcat = jnp.dot(x, wcat_ref[...], preferred_element_type=jnp.float32) + bcat_ref[...]
    # Linear(F,256) + ReLU -- cast to bf16 before ReLU (bit-equivalent, half bytes).
    h = jnp.maximum(hcat[:, :256].astype(jnp.bfloat16), jnp.bfloat16(0))
    sc = hcat[:, 256:]                      # shortcut: Linear(F,128), kept f32

    # Linear(256,1024) + ReLU (bias add in f32, ReLU on the bf16 copy).
    h = jnp.dot(h, w2_ref[...], preferred_element_type=jnp.float32) + b2_ref[...]
    h = jnp.maximum(h.astype(jnp.bfloat16), jnp.bfloat16(0))

    # Linear(1024,128) + ReLU (small: stays f32).
    h = jnp.dot(h, w3_ref[...], preferred_element_type=jnp.float32) + b3_ref[...]
    h = jnp.maximum(h, 0.0)
    # Dropout(0.2): identity at inference time.

    # Residual add + sigmoid (f32 on VPU/EUP).
    s = jax.nn.sigmoid(h + sc)

    # Output head Linear(128,1): VPU multiply + lane reduction instead of a
    # 1-column MXU matmul.
    out = jnp.sum(s * wo_ref[...], axis=-1, keepdims=True) + bo_ref[...]
    o_ref[...] = out.astype(o_ref.dtype)


def residual_linear_forward(x, kp, *, block_b=None):
    """x: (B, n_feature) float32. kp: kernel-layout params from pack_params()."""
    B, F = x.shape
    tb = _choose_tile(B) if block_b is None else min(block_b, _round_up(B, 8))
    Bp = _round_up(B, tb)
    if Bp != B:
        x = jnp.pad(x, ((0, Bp - B), (0, 0)))
    x = x.astype(jnp.bfloat16)

    wcat, bcat = kp["wcat"], kp["bcat"]
    w2, b2 = kp["w2"], kp["b2"]
    w3, b3 = kp["w3"], kp["b3"]
    wo, bo = kp["wo"], kp["bo"]

    # x/out are batch-tiled; all weights/biases use a constant block index so
    # they are DMA'd once and stay VMEM-resident across grid steps.
    in_specs = [
        pl.BlockSpec((tb, F), lambda i: (i, 0)),
        pl.BlockSpec(wcat.shape, lambda i: (0, 0)),
        pl.BlockSpec(bcat.shape, lambda i: (0, 0)),
        pl.BlockSpec(w2.shape, lambda i: (0, 0)),
        pl.BlockSpec(b2.shape, lambda i: (0, 0)),
        pl.BlockSpec(w3.shape, lambda i: (0, 0)),
        pl.BlockSpec(b3.shape, lambda i: (0, 0)),
        pl.BlockSpec(wo.shape, lambda i: (0, 0)),
        pl.BlockSpec(bo.shape, lambda i: (0, 0)),
    ]
    out_spec = pl.BlockSpec((tb, 1), lambda i: (i, 0))

    # Scheduler hint: 3 fused matmuls + per-row sigmoid; I/O is x/out rows + weights.
    weight_bytes = sum(
        int(a.size) * a.dtype.itemsize for a in (wcat, bcat, w2, b2, w3, b3, wo, bo)
    )
    cost = pl.CostEstimate(
        flops=2 * Bp * (F * 384 + 256 * 1024 + 1024 * 128),
        transcendentals=Bp * 128,
        bytes_accessed=Bp * (2 * F + 4) + weight_bytes,
    )

    out = pl.pallas_call(
        _residual_linear_kernel,
        out_shape=jax.ShapeDtypeStruct((Bp, 1), jnp.float32),
        grid=(Bp // tb,),
        in_specs=in_specs,
        out_specs=out_spec,
        compiler_params=pltpu.CompilerParams(
            dimension_semantics=("parallel",),
            # ~0.8 MB bf16 weights (x2 double-buffered) + tb<=1024 intermediates
            # (~12 MB worst case) -> 32 MiB leaves headroom even on v7x (64 MiB).
            vmem_limit_bytes=32 << 20,
        ),
        cost_estimate=cost,
    )(x, wcat, bcat, w2, b2, w3, b3, wo, bo)
    return out[:B]


def init_params(key, n_feature):
    """f32 params mimicking PyTorch nn.Linear default init.
    Weights stored transposed relative to PyTorch: (in_features, out_features)."""
    def linear(key, fan_in, fan_out):
        kw, kb = jax.random.split(key)
        bound = 1.0 / jnp.sqrt(jnp.float32(fan_in))
        w = jax.random.uniform(kw, (fan_in, fan_out), jnp.float32, -bound, bound)
        b = jax.random.uniform(kb, (1, fan_out), jnp.float32, -bound, bound)
        return w, b

    k1, k2, k3, ks, ko = jax.random.split(key, 5)
    w1, b1 = linear(k1, n_feature, 256)
    w2, b2 = linear(k2, 256, 1024)
    w3, b3 = linear(k3, 1024, 128)
    ws, bs = linear(ks, n_feature, 128)
    wo, bo = linear(ko, 128, 1)
    return dict(w1=w1, b1=b1, w2=w2, b2=b2, w3=w3, b3=b3,
                ws=ws, bs=bs, wo=wo, bo=bo)


def pack_params(p):
    """Kernel layout: fused [w1|ws] / [b1|bs], bf16 matmul weights, f32 biases,
    output head weight reshaped to a (1, 128) row for the VPU reduction."""
    return dict(
        wcat=jnp.concatenate([p["w1"], p["ws"]], axis=1).astype(jnp.bfloat16),
        bcat=jnp.concatenate([p["b1"], p["bs"]], axis=1),
        w2=p["w2"].astype(jnp.bfloat16), b2=p["b2"],
        w3=p["w3"].astype(jnp.bfloat16), b3=p["b3"],
        wo=p["wo"].reshape(1, -1), bo=p["bo"].reshape(1, 1),
    )


def reference_forward(x, p, matmul_dtype=jnp.float32):
    """Pure-JAX reference. matmul_dtype=bfloat16 mirrors the kernel's MXU dtype.
    (The kernel intentionally matches the bf16 reference; the loose f32
    tolerance below only bounds ordinary bf16 rounding for inference.)"""
    def mm(a, w):
        return jnp.dot(a.astype(matmul_dtype), w.astype(matmul_dtype),
                       preferred_element_type=jnp.float32)
    h = jax.nn.relu(mm(x, p["w1"]) + p["b1"])
    h = jax.nn.relu(mm(h, p["w2"]) + p["b2"])
    h = jax.nn.relu(mm(h, p["w3"]) + p["b3"])
    sc = mm(x, p["ws"]) + p["bs"]
    s = jax.nn.sigmoid(h + sc)
    # Head kept in f32 (same formulation as the kernel's VPU reduction).
    return jnp.sum(s * p["wo"].reshape(1, -1), axis=-1, keepdims=True) + p["bo"]


if __name__ == "__main__":
    n_feature = 32
    batch = 8

    key = jax.random.PRNGKey(0)
    k_x, k_p = jax.random.split(key)
    x = jax.random.normal(k_x, (batch, n_feature), jnp.float32)
    params = init_params(k_p, n_feature)
    kparams = pack_params(params)

    out = jax.block_until_ready(residual_linear_forward(x, kparams))
    assert out.shape == (batch, 1), out.shape

    ref_bf16 = jax.block_until_ready(reference_forward(x, params, jnp.bfloat16))
    ref_f32 = jax.block_until_ready(reference_forward(x, params, jnp.float32))
    err_bf16 = float(jnp.max(jnp.abs(out - ref_bf16)))
    err_f32 = float(jnp.max(jnp.abs(out - ref_f32)))
    assert jnp.allclose(out, ref_bf16, atol=2e-3, rtol=2e-3), err_bf16
    assert jnp.allclose(out, ref_f32, atol=5e-2, rtol=5e-2), err_f32

    print("KERNEL_OK")
</pallas_src>

<mosaic_0001>
module attributes {stable_mosaic.version = 11 : i64} {
  func.func @_residual_linear_kernel(%arg0: i32, %arg1: memref<8x32xbf16, #tpu.memory_space<vmem>>, %arg2: memref<32x384xbf16, #tpu.memory_space<vmem>>, %arg3: memref<1x384xf32, #tpu.memory_space<vmem>>, %arg4: memref<256x1024xbf16, #tpu.memory_space<vmem>>, %arg5: memref<1x1024xf32, #tpu.memory_space<vmem>>, %arg6: memref<1024x128xbf16, #tpu.memory_space<vmem>>, %arg7: memref<1x128xf32, #tpu.memory_space<vmem>>, %arg8: memref<1x128xf32, #tpu.memory_space<vmem>>, %arg9: memref<1x1xf32, #tpu.memory_space<vmem>>, %arg10: memref<8x1xf32, #tpu.memory_space<vmem>>) attributes {dimension_semantics = [#tpu.dimension_semantics<parallel>], iteration_bounds = array<i64: 1>, scalar_prefetch = 0 : i64, scratch_operands = 0 : i64, tpu.core_type = #tpu.core_type<tc>, window_params = [{transform_indices = @transform_0, window_bounds = array<i64: 8, 32>}, {pipeline_mode = #tpu.pipeline_mode<synchronous>, transform_indices = @transform_1, window_bounds = array<i64: 32, 384>}, {pipeline_mode = #tpu.pipeline_mode<synchronous>, transform_indices = @transform_2, window_bounds = array<i64: 1, 384>}, {pipeline_mode = #tpu.pipeline_mode<synchronous>, transform_indices = @transform_3, window_bounds = array<i64: 256, 1024>}, {pipeline_mode = #tpu.pipeline_mode<synchronous>, transform_indices = @transform_4, window_bounds = array<i64: 1, 1024>}, {pipeline_mode = #tpu.pipeline_mode<synchronous>, transform_indices = @transform_5, window_bounds = array<i64: 1024, 128>}, {pipeline_mode = #tpu.pipeline_mode<synchronous>, transform_indices = @transform_6, window_bounds = array<i64: 1, 128>}, {pipeline_mode = #tpu.pipeline_mode<synchronous>, transform_indices = @transform_7, window_bounds = array<i64: 1, 128>}, {pipeline_mode = #tpu.pipeline_mode<synchronous>, transform_indices = @transform_8, window_bounds = array<i64: 1, 1>}, {transform_indices = @transform_9, window_bounds = array<i64: 8, 1>}]} {
    %c0 = arith.constant 0 : index
    %c0_0 = arith.constant 0 : index
    %0 = vector.load %arg1[%c0, %c0_0] : memref<8x32xbf16, #tpu.memory_space<vmem>>, vector<8x32xbf16>
    %c0_1 = arith.constant 0 : index
    %c0_2 = arith.constant 0 : index
    %1 = vector.load %arg2[%c0_1, %c0_2] : memref<32x384xbf16, #tpu.memory_space<vmem>>, vector<32x384xbf16>
    %cst = arith.constant dense<0.000000e+00> : vector<8x384xf32>
    %2 = tpu.matmul %0, %1, %cst {dimension_numbers = #tpu.dot_dimension_numbers<[1], [0], [0], [1], [0, 0, 1, 1], [], []>} : vector<8x32xbf16>, vector<32x384xbf16>, vector<8x384xf32> -> vector<8x384xf32>
    %c0_3 = arith.constant 0 : index
    %c0_4 = arith.constant 0 : index
    %3 = vector.load %arg3[%c0_3, %c0_4] : memref<1x384xf32, #tpu.memory_space<vmem>>, vector<1x384xf32>
    %4 = vector.broadcast %3 : vector<1x384xf32> to vector<8x384xf32>
    %5 = arith.addf %2, %4 : vector<8x384xf32>
    %6 = vector.extract_strided_slice %5 {offsets = [0, 0], sizes = [8, 256], strides = [1, 1]} : vector<8x384xf32> to vector<8x256xf32>
    %7 = arith.truncf %6 : vector<8x256xf32> to vector<8x256xbf16>
    %cst_5 = arith.constant 0.000000e+00 : bf16
    %8 = vector.broadcast %cst_5 : bf16 to vector<8x256xbf16>
    %9 = arith.maximumf %7, %8 : vector<8x256xbf16>
    %10 = vector.extract_strided_slice %5 {offsets = [0, 256], sizes = [8, 128], strides = [1, 1]} : vector<8x384xf32> to vector<8x128xf32>
    %c0_6 = arith.constant 0 : index
    %c0_7 = arith.constant 0 : index
    %11 = vector.load %arg4[%c0_6, %c0_7] : memref<256x1024xbf16, #tpu.memory_space<vmem>>, vector<256x1024xbf16>
    %cst_8 = arith.constant dense<0.000000e+00> : vector<8x1024xf32>
    %12 = tpu.matmul %9, %11, %cst_8 {dimension_numbers = #tpu.dot_dimension_numbers<[1], [0], [0], [1], [0, 0, 1, 1], [], []>} : vector<8x256xbf16>, vector<256x1024xbf16>, vector<8x1024xf32> -> vector<8x1024xf32>
    %c0_9 = arith.constant 0 : index
    %c0_10 = arith.constant 0 : index
    %13 = vector.load %arg5[%c0_9, %c0_10] : memref<1x1024xf32, #tpu.memory_space<vmem>>, vector<1x1024xf32>
    %14 = vector.broadcast %13 : vector<1x1024xf32> to vector<8x1024xf32>
    %15 = arith.addf %12, %14 : vector<8x1024xf32>
    %16 = arith.truncf %15 : vector<8x1024xf32> to vector<8x1024xbf16>
    %cst_11 = arith.constant 0.000000e+00 : bf16
    %17 = vector.broadcast %cst_11 : bf16 to vector<8x1024xbf16>
    %18 = arith.maximumf %16, %17 : vector<8x1024xbf16>
    %c0_12 = arith.constant 0 : index
    %c0_13 = arith.constant 0 : index
    %19 = vector.load %arg6[%c0_12, %c0_13] : memref<1024x128xbf16, #tpu.memory_space<vmem>>, vector<1024x128xbf16>
    %cst_14 = arith.constant dense<0.000000e+00> : vector<8x128xf32>
    %20 = tpu.matmul %18, %19, %cst_14 {dimension_numbers = #tpu.dot_dimension_numbers<[1], [0], [0], [1], [0, 0, 1, 1], [], []>} : vector<8x1024xbf16>, vector<1024x128xbf16>, vector<8x128xf32> -> vector<8x128xf32>
    %c0_15 = arith.constant 0 : index
    %c0_16 = arith.constant 0 : index
    %21 = vector.load %arg7[%c0_15, %c0_16] : memref<1x128xf32, #tpu.memory_space<vmem>>, vector<1x128xf32>
    %22 = vector.broadcast %21 : vector<1x128xf32> to vector<8x128xf32>
    %23 = arith.addf %20, %22 : vector<8x128xf32>
    %cst_17 = arith.constant 0.000000e+00 : f32
    %24 = vector.broadcast %cst_17 : f32 to vector<8x128xf32>
    %25 = arith.maximumf %23, %24 : vector<8x128xf32>
    %26 = arith.addf %25, %10 : vector<8x128xf32>
    %27 = arith.negf %26 : vector<8x128xf32>
    %28 = math.exp %27 : vector<8x128xf32>
    %cst_18 = arith.constant 1.000000e+00 : f32
    %29 = vector.broadcast %cst_18 : f32 to vector<8x128xf32>
    %30 = arith.addf %29, %28 : vector<8x128xf32>
    %31 = arith.divf %29, %30 : vector<8x128xf32>
    %c0_19 = arith.constant 0 : index
    %c0_20 = arith.constant 0 : index
    %32 = vector.load %arg8[%c0_19, %c0_20] : memref<1x128xf32, #tpu.memory_space<vmem>>, vector<1x128xf32>
    %33 = vector.broadcast %32 : vector<1x128xf32> to vector<8x128xf32>
    %34 = arith.mulf %31, %33 : vector<8x128xf32>
    %cst_21 = arith.constant dense<0.000000e+00> : vector<8xf32>
    %35 = vector.multi_reduction <add>, %34, %cst_21 [1] : vector<8x128xf32> to vector<8xf32>
    %36 = vector.shape_cast %35 : vector<8xf32> to vector<8x1xf32>
    %c0_22 = arith.constant 0 : index
    %c0_23 = arith.constant 0 : index
    %37 = vector.load %arg9[%c0_22, %c0_23] : memref<1x1xf32, #tpu.memory_space<vmem>>, vector<1x1xf32>
    %38 = vector.broadcast %37 : vector<1x1xf32> to vector<8x1xf32>
    %39 = arith.addf %36, %38 : vector<8x1xf32>
    %c0_24 = arith.constant 0 : index
    %c0_25 = arith.constant 0 : index
    %40 = vector.load %arg10[%c0_24, %c0_25] : memref<8x1xf32, #tpu.memory_space<vmem>>, vector<8x1xf32>
    tpu.vector_store %arg10[%c0_24, %c0_25], %39 {strides = array<i32>} : memref<8x1xf32, #tpu.memory_space<vmem>>, vector<8x1xf32>,
    return
  }
  func.func @transform_0(%arg0: i32) -> (i32, i32) {
    %c0_i32 = arith.constant 0 : i32
    %c0_i32_0 = arith.constant 0 : i32
    return %arg0, %c0_i32 : i32, i32
  }
  func.func @transform_1(%arg0: i32) -> (i32, i32) {
    %c0_i32 = arith.constant 0 : i32
    %c0_i32_0 = arith.constant 0 : i32
    %c0_i32_1 = arith.constant 0 : i32
    return %c0_i32, %c0_i32_0 : i32, i32
  }
  func.func @transform_2(%arg0: i32) -> (i32, i32) {
    %c0_i32 = arith.constant 0 : i32
    %c0_i32_0 = arith.constant 0 : i32
    %c0_i32_1 = arith.constant 0 : i32
    return %c0_i32, %c0_i32_0 : i32, i32
  }
  func.func @transform_3(%arg0: i32) -> (i32, i32) {
    %c0_i32 = arith.constant 0 : i32
    %c0_i32_0 = arith.constant 0 : i32
    %c0_i32_1 = arith.constant 0 : i32
    return %c0_i32, %c0_i32_0 : i32, i32
  }
  func.func @transform_4(%arg0: i32) -> (i32, i32) {
    %c0_i32 = arith.constant 0 : i32
    %c0_i32_0 = arith.constant 0 : i32
    %c0_i32_1 = arith.constant 0 : i32
    return %c0_i32, %c0_i32_0 : i32, i32
  }
  func.func @transform_5(%arg0: i32) -> (i32, i32) {
    %c0_i32 = arith.constant 0 : i32
    %c0_i32_0 = arith.constant 0 : i32
    %c0_i32_1 = arith.constant 0 : i32
    return %c0_i32, %c0_i32_0 : i32, i32
  }
  func.func @transform_6(%arg0: i32) -> (i32, i32) {
    %c0_i32 = arith.constant 0 : i32
    %c0_i32_0 = arith.constant 0 : i32
    %c0_i32_1 = arith.constant 0 : i32
    return %c0_i32, %c0_i32_0 : i32, i32
  }
  func.func @transform_7(%arg0: i32) -> (i32, i32) {
    %c0_i32 = arith.constant 0 : i32
    %c0_i32_0 = arith.constant 0 : i32
    %c0_i32_1 = arith.constant 0 : i32
    return %c0_i32, %c0_i32_0 : i32, i32
  }
  func.func @transform_8(%arg0: i32) -> (i32, i32) {
    %c0_i32 = arith.constant 0 : i32
    %c0_i32_0 = arith.constant 0 : i32
    %c0_i32_1 = arith.constant 0 : i32
    return %c0_i32, %c0_i32_0 : i32, i32
  }
  func.func @transform_9(%arg0: i32) -> (i32, i32) {
    %c0_i32 = arith.constant 0 : i32
    %c0_i32_0 = arith.constant 0 : i32
    return %arg0, %c0_i32 : i32, i32
  }
}

</mosaic_0001>

<bundles_post_ra>
// kernel: tpu_custom_call.1
= control target key start
LH: loop header
LB: loop body
LE: loop exit
PB: predicated region body
PF: predicated region fallthrough
CT: control target
= control target key end

     0   :  { %s2613_s0 = inlined_call_operand.hbm [shape: bf16[8,32], index: 0, kind: input, shape index: {}]   ;;  %s2614_s1 = inlined_call_operand.hbm [shape: bf16[32,384], index: 1, kind: input, shape index: {}]   ;;  %s2615_s2 = inlined_call_operand.vmem [shape: f32[1,384], index: 2, kind: input, shape index: {}]   ;;  %s2616_s3 = inlined_call_operand.hbm [shape: bf16[256,1024], index: 3, kind: input, shape index: {}]   ;;  %s2617_s4 = inlined_call_operand.vmem [shape: f32[1,1024], index: 4, kind: input, shape index: {}]   ;;  %s2618_s5 = inlined_call_operand.hbm [shape: bf16[1024,128], index: 5, kind: input, shape index: {}]   ;;  %s2619_s6 = inlined_call_operand.vmem [shape: f32[1,128], index: 6, kind: input, shape index: {}]   ;;  %s2620_s7 = inlined_call_operand.vmem [shape: f32[1,128], index: 7, kind: input, shape index: {}]   ;;  %s2621_s8 = inlined_call_operand.<no memory space> [shape: f32[1,1], index: 8, kind: input, shape index: {}]   ;;  %s2622_s9 = inlined_call_operand.vmem [shape: f32[8,1], index: 9, kind: output, shape index: {}]  }
   0x1   :  { %v14_v0 = vstv %s2621_s8 }
   0x2   :  { %15 = vst [vmem:[#allocation2] sm:$0x1] %v14_v0 }
   0x3   :  { %16 = vsyncpa [#allocation4], 0 }
   0x4   :  { %17 = vsyncpa [#allocation6], 0 }
   0x5   :  { %18 = vsyncpa [#allocation9], 0  ;;  %s2425_s11 = smov [#allocation5]   ;;  %s2331_s15 = scalar_lea.hbm %s2614_s1, 768 }
   0x6   :  { %s34_s12 = sshll.u32 %s2425_s11, 4  ;;  %p2332_p0 = scmp.ne.s32.totalorder %s2614_s1, %s2331_s15  ;;  %s35_s12 = int_to_ptr.vmem [resolvable:$true] %s34_s12 }
   0x7   :  { %p2335_p1 = scmp.lt.u32.totalorder %s2331_s15, %s2614_s1 }
   0x9   :  { %p2337_p2 = pnand %p2335_p1, %p2332_p0 }
   0xb   :  { %2340 = shalt.err (!%p2337_p2)
}
   0xc   :  { %s2341_s8 = scalar_lea.vmem %s35_s12, 768  ;;  %p2346_p4 = scmp.lt.s32.totalorder %s35_s12, %s35_s12 }
   0xd   :  { %p2342_p3 = scmp.ne.s32.totalorder %s35_s12, %s2341_s8  ;;  %p2347_p5 = scmp.lt.s32.totalorder %s2341_s8, %s2341_s8 }
   0xf   :  { %p2348_p6 = por %p2347_p5, %p2346_p4 }
  0x11   :  { %p2349_p7 = pnand %p2348_p6, %p2342_p3 }
  0x13   :  { %2352 = shalt.err (!%p2349_p7)
}
  0x14   :  { %s2426_s20 = smov 192   ;;  %s2427_s21 = smov 12  }
  0x15   :  { %40 = dma.hbm_to_vmem [thread:$0]  %s2614_s1, 768, %s35_s12, [#allocation6], %s2426_s20, %s2426_s20, %s2427_s21  }
  0x16   :  { %s2428_s24 = smov [#allocation3]   ;;  %s2429_s26 = smov [#allocation7]  }
  0x17   :  { %s25_s25 = sshll.u32 %s2428_s24, 4  ;;  %s48_s27 = sshll.u32 %s2429_s26, 4  ;;  %s26_s25 = int_to_ptr.vmem [resolvable:$true] %s25_s25  ;;  %s49_s27 = int_to_ptr.vmem [resolvable:$true] %s48_s27 }
  0x18   :  { %s2353_s30 = scalar_lea.hbm %s2613_s0, 64 }
  0x19   :  { %p2354_p8 = scmp.ne.s32.totalorder %s2613_s0, %s2353_s30  ;;  %p2357_p9 = scmp.lt.u32.totalorder %s2353_s30, %s2613_s0 }
  0x1b   :  { %p2359_p10 = pnand %p2357_p9, %p2354_p8 }
  0x1d   :  { %2362 = shalt.err (!%p2359_p10)
}
  0x1e   :  { %s2363_s1 = scalar_lea.vmem %s26_s25, 64  ;;  %p2368_p12 = scmp.lt.s32.totalorder %s26_s25, %s26_s25 }
  0x1f   :  { %p2364_p11 = scmp.ne.s32.totalorder %s26_s25, %s2363_s1  ;;  %p2369_p13 = scmp.lt.s32.totalorder %s2363_s1, %s2363_s1 }
  0x21   :  { %p2370_p0 = por %p2369_p13, %p2368_p12 }
  0x23   :  { %p2371_p1 = pnand %p2370_p0, %p2364_p11 }
  0x25   :  { %2374 = shalt.err (!%p2371_p1)
}
  0x26   :  { %28 = dma.hbm_to_vmem [thread:$0]  %s2613_s0, 64, %s26_s25, [#allocation4]  }
  0x27   :  { %s2375_s18 = scalar_lea.hbm %s2616_s3, 16384 }
  0x28   :  { %p2376_p2 = scmp.ne.s32.totalorder %s2616_s3, %s2375_s18  ;;  %p2379_p3 = scmp.lt.u32.totalorder %s2375_s18, %s2616_s3 }
  0x2a   :  { %p2381_p4 = pnand %p2379_p3, %p2376_p2 }
  0x2c   :  { %2384 = shalt.err (!%p2381_p4)
}
  0x2d   :  { %s2385_s22 = scalar_lea.vmem %s49_s27, 16384  ;;  %p2390_p6 = scmp.lt.s32.totalorder %s49_s27, %s49_s27 }
  0x2e   :  { %p2386_p5 = scmp.ne.s32.totalorder %s49_s27, %s2385_s22  ;;  %p2391_p7 = scmp.lt.s32.totalorder %s2385_s22, %s2385_s22 }
  0x30   :  { %p2392_p8 = por %p2391_p7, %p2390_p6 }
  0x32   :  { %p2393_p9 = pnand %p2392_p8, %p2386_p5 }
  0x34   :  { %2396 = shalt.err (!%p2393_p9)
}
  0x35   :  { %s2430_s0 = smov 512   ;;  %s2431_s23 = smov 32  }
  0x36   :  { %54 = dma.hbm_to_vmem [thread:$0]  %s2616_s3, 16384, %s49_s27, [#allocation6], %s2430_s0, %s2430_s0, %s2431_s23  }
  0x37   :  { %s2432_s26 = smov [#allocation8]   ;;  %s2397_s10 = scalar_lea.hbm %s2618_s5, 8192 }
  0x38   :  { %s62_s28 = sshll.u32 %s2432_s26, 4  ;;  %p2398_p10 = scmp.ne.s32.totalorder %s2618_s5, %s2397_s10  ;;  %s63_s28 = int_to_ptr.vmem [resolvable:$true] %s62_s28 }
  0x39   :  { %p2401_p11 = scmp.lt.u32.totalorder %s2397_s10, %s2618_s5 }
  0x3b   :  { %p2403_p12 = pnand %p2401_p11, %p2398_p10 }
  0x3d   :  { %2406 = shalt.err (!%p2403_p12)
}
  0x3e   :  { %s2407_s12 = scalar_lea.vmem %s63_s28, 8192  ;;  %p2412_p0 = scmp.lt.s32.totalorder %s63_s28, %s63_s28 }
  0x3f   :  { %p2408_p13 = scmp.ne.s32.totalorder %s63_s28, %s2407_s12  ;;  %p2413_p1 = scmp.lt.s32.totalorder %s2407_s12, %s2407_s12 }
  0x41   :  { %p2414_p2 = por %p2413_p1, %p2412_p0 }
  0x43   :  { %p2415_p3 = pnand %p2414_p2, %p2408_p13 }
  0x45   :  { %2418 = shalt.err (!%p2415_p3)
}
  0x46   :  { %s2433_s3 = smov 64   ;;  %s2434_s27 = smov 4  }
  0x47   :  { %68 = dma.hbm_to_vmem [thread:$0]  %s2618_s5, 8192, %s63_s28, [#allocation9], %s2433_s3, %s2433_s3, %s2434_s27  }
  0x48   :  { %2419 = dma.done.wait [#allocation4], 64  }
  0x49   :  { %2420 = vsyncadd [#allocation4], 4294967232 }
  0x4a   :  { %2421 = dma.done.wait [#allocation6], 17152  }
  0x4b   :  { %2422 = vsyncadd [#allocation6], 4294950144 }
  0x4c   :  { %2423 = dma.done.wait [#allocation9], 8192  }
  0x4d   :  { %2424 = vsyncadd [#allocation9], 4294959104  ;;  %v2435_v1 = vmov 0   ;;  %v2436_v2 = vmov 0.0   ;;  %vm2437_vm0 = vmmov 0   ;;  %v235_v9 = vld [vmem:[#allocation7] sm:$0xff] }
  0x4e   :  { %182 = vmatprep.mubr.bf16.mxu0 %v2435_v1  ;;  %2234 = vmatprep.subr.bf16.mxu1 %v2436_v2  ;;  %v2255_v3 = vld [vmem:[#allocation5 + $0x4] ss:$12 sps:$4 sm:$0xff]   ;;  %v2257_v4 = vld [vmem:[#allocation5] ss:$12 sps:$4 sm:$0xff]   ;;  %v2258_v5 = vld [vmem:[#allocation5 + $0x1c] ss:$12 sps:$4 sm:$0xff]  }
  0x4f   :  { %2238 = vmatprep.mubr.msk.bf16.mxu1 %vm2437_vm0, %v2436_v2  ;;  %150 = vmatprep.subr.bf16.mxu0 %v2255_v3  ;;  %v2260_v6 = vld [vmem:[#allocation5 + $0x18] ss:$12 sps:$4 sm:$0xff]   ;;  %v2261_v7 = vld [vmem:[#allocation5 + $0x8] ss:$12 sps:$4 sm:$0xff]   ;;  %v2262_v8 = vld [vmem:[#allocation5 + $0x20] ss:$12 sps:$4 sm:$0xff]  }
  0x50   :  { %151 = vmatpush1.bf16.msra.mxu0 %v2257_v4  ;;  %2235 = vmatpush3.bf16.msra.mxu1 %v2261_v7  ;;  %v239_v10 = vld [vmem:[#allocation7 + $0x20] sm:$0xff]  ;;  %v236_v11 = vld [vmem:[#allocation7 + $0x8] sm:$0xff]  ;;  %vm146_vm1 = vcmask 261120   ;;  %vm1930_vm2 = vcmask 7168  }
  0x51   :  { %152 = vmatprep.subr.bf16.mxu0 %v2258_v5  ;;  %2236 = vmatprep.subr.bf16.mxu1 %v2436_v2  ;;  %v1948_v12 = vcombine.high %v235_v9, %v239_v10  ;;  %v240_v13 = vld [vmem:[#allocation7 + $0x28] sm:$0xff]  ;;  %v243_v14 = vld [vmem:[#allocation7 + $0x40] sm:$0xff]  ;;  %v1947_v17 = vcombine.low %v235_v9, %v239_v10 }
  0x52   :  { %v247_v15 = vld [vmem:[#allocation7 + $0x60] sm:$0xff]  ;;  %v88_v16 = vld [vmem:[#allocation3] sm:$0xf]  ;;  %v1950_v18 = vcombine.high %v236_v11, %v240_v13  ;;  %v1949_v22 = vcombine.low %v236_v11, %v240_v13 }
  0x53   :  { %v244_v19 = vld [vmem:[#allocation7 + $0x48] sm:$0xff]  ;;  %v1956_v21 = vcombine.high %v243_v14, %v247_v15  ;;  %v251_v23 = vld [vmem:[#allocation7 + $0x80] sm:$0xff]  ;;  %v1955_v26 = vcombine.low %v243_v14, %v247_v15 }
  0x54   :  { %153 = vmatpush1.bf16.msra.mxu0 %v2260_v6  ;;  %v248_v20 = vld [vmem:[#allocation7 + $0x68] sm:$0xff]  ;;  %2237 = vmatpush3.bf16.msra.mxu1 %v2262_v8  ;;  %v255_v24 = vld [vmem:[#allocation7 + $0xa0] sm:$0xff] }
  0x55   :  { %1045 = vmatprep.subr.bf16.mxu0 %v1948_v12  ;;  %1086 = vmatprep.subr.bf16.mxu1 %v1950_v18  ;;  %v1958_v25 = vcombine.high %v244_v19, %v248_v20  ;;  %v252_v27 = vld [vmem:[#allocation7 + $0x88] sm:$0xff]  ;;  %v1964_v29 = vcombine.high %v251_v23, %v255_v24  ;;  %v1957_v30 = vcombine.low %v244_v19, %v248_v20  ;;  %v259_v31 = vld [vmem:[#allocation7 + $0xc0] sm:$0xff] }
  0x56   :  { %v256_v28 = vld [vmem:[#allocation7 + $0xa8] sm:$0xff]  ;;  %v263_v32 = vld [vmem:[#allocation7 + $0xe0] sm:$0xff]  ;;  %v1963_v34 = vcombine.low %v251_v23, %v255_v24 }
  0x57   :  { %1945 = vmatmul.mubr.msk.bf16.vlgmr.msra.gmra.mrb[0].mxu0 %vm146_vm1, %v88_v16  ;;  %2239 = vmatmul.mubr.msk.bf16.vlgmr.msra.gmra.mrb[0].mxu1 %vm146_vm1, %v88_v16  ;;  %v1966_v33 = vcombine.high %v252_v27, %v256_v28  ;;  %v260_v35 = vld [vmem:[#allocation7 + $0xc8] sm:$0xff]  ;;  %v1972_v37 = vcombine.high %v259_v31, %v263_v32  ;;  %v1965_v38 = vcombine.low %v252_v27, %v256_v28  ;;  %v267_v39 = vld [vmem:[#allocation7 + $0x100] sm:$0xff] }
  0x58   :  { %1046 = vmatpush1.bf16.msra.mxu0 %v1947_v17  ;;  %1087 = vmatpush1.bf16.msra.mxu1 %v1949_v22  ;;  %v264_v36 = vld [vmem:[#allocation7 + $0xe8] sm:$0xff]  ;;  %v271_v40 = vld [vmem:[#allocation7 + $0x120] sm:$0xff]  ;;  %v1971_v42 = vcombine.low %v259_v31, %v263_v32 }
  0x59   :  { %1047 = vmatprep.subr.bf16.mxu0 %v1956_v21  ;;  %1088 = vmatprep.subr.bf16.mxu1 %v1958_v25  ;;  %v1974_v41 = vcombine.high %v260_v35, %v264_v36  ;;  %v268_v43 = vld [vmem:[#allocation7 + $0x108] sm:$0xff]  ;;  %v1980_v45 = vcombine.high %v267_v39, %v271_v40  ;;  %v1973_v46 = vcombine.low %v260_v35, %v264_v36  ;;  %v275_v47 = vld [vmem:[#allocation7 + $0x140] sm:$0xff] }
  0x5a   :  { %v272_v44 = vld [vmem:[#allocation7 + $0x128] sm:$0xff]  ;;  %v279_v48 = vld [vmem:[#allocation7 + $0x160] sm:$0xff]  ;;  %v1979_v51 = vcombine.low %v267_v39, %v271_v40 }
  0x5b   :  { %v1982_v49 = vcombine.high %v268_v43, %v272_v44  ;;  %v276_v50 = vld [vmem:[#allocation7 + $0x148] sm:$0xff]  ;;  %v283_v53 = vld [vmem:[#allocation7 + $0x180] sm:$0xff]  ;;  %v1988_v55 = vcombine.high %v275_v47, %v279_v48  ;;  %v1981_v56 = vcombine.low %v268_v43, %v272_v44  ;;  %v1987_v60 = vcombine.low %v275_v47, %v279_v48 }
  0x5c   :  { %1048 = vmatpush1.bf16.msra.mxu0 %v1955_v26  ;;  %1089 = vmatpush1.bf16.msra.mxu1 %v1957_v30  ;;  %v280_v52 = vld [vmem:[#allocation7 + $0x168] sm:$0xff]  ;;  %v287_v54 = vld [vmem:[#allocation7 + $0x1a0] sm:$0xff] }
  0x5d   :  { %1049 = vmatprep.subr.bf16.mxu0 %v1964_v29  ;;  %1090 = vmatprep.subr.bf16.mxu1 %v1966_v33  ;;  %v284_v57 = vld [vmem:[#allocation7 + $0x188] sm:$0xff]  ;;  %v1990_v59 = vcombine.high %v276_v50, %v280_v52  ;;  %v291_v61 = vld [vmem:[#allocation7 + $0x1c0] sm:$0xff]  ;;  %v1996_v63 = vcombine.high %v283_v53, %v287_v54  ;;  %v1989_v0 = vcombine.low %v276_v50, %v280_v52 }
  0x5e   :  { %v288_v58 = vld [vmem:[#allocation7 + $0x1a8] sm:$0xff]  ;;  %v295_v62 = vld [vmem:[#allocation7 + $0x1e0] sm:$0xff]  ;;  %v1995_v5 = vcombine.low %v283_v53, %v287_v54 }
  0x5f   :  { %v292_v2 = vld [vmem:[#allocation7 + $0x1c8] sm:$0xff]  ;;  %v1998_v4 = vcombine.high %v284_v57, %v288_v58  ;;  %v299_v6 = vld [vmem:[#allocation7 + $0x200] sm:$0xff]  ;;  %v2004_v8 = vcombine.high %v291_v61, %v295_v62  ;;  %v1997_v9 = vcombine.low %v284_v57, %v288_v58  ;;  %v2003_v13 = vcombine.low %v291_v61, %v295_v62 }
  0x60   :  { %1050 = vmatpush1.bf16.msra.mxu0 %v1963_v34  ;;  %1091 = vmatpush1.bf16.msra.mxu1 %v1965_v38  ;;  %v296_v3 = vld [vmem:[#allocation7 + $0x1e8] sm:$0xff]  ;;  %v303_v7 = vld [vmem:[#allocation7 + $0x220] sm:$0xff] }
  0x61   :  { %1051 = vmatprep.subr.bf16.mxu0 %v1972_v37  ;;  %1092 = vmatprep.subr.bf16.mxu1 %v1974_v41  ;;  %v300_v10 = vld [vmem:[#allocation7 + $0x208] sm:$0xff]  ;;  %v2006_v12 = vcombine.high %v292_v2, %v296_v3  ;;  %v307_v14 = vld [vmem:[#allocation7 + $0x240] sm:$0xff]  ;;  %v2012_v16 = vcombine.high %v299_v6, %v303_v7  ;;  %v2005_v17 = vcombine.low %v292_v2, %v296_v3 }
  0x62   :  { %v304_v11 = vld [vmem:[#allocation7 + $0x228] sm:$0xff]  ;;  %v311_v15 = vld [vmem:[#allocation7 + $0x260] sm:$0xff]  ;;  %v2011_v21 = vcombine.low %v299_v6, %v303_v7 }
  0x63   :  { %v308_v18 = vld [vmem:[#allocation7 + $0x248] sm:$0xff]  ;;  %v2014_v20 = vcombine.high %v300_v10, %v304_v11  ;;  %v315_v22 = vld [vmem:[#allocation7 + $0x280] sm:$0xff]  ;;  %v2020_v24 = vcombine.high %v307_v14, %v311_v15  ;;  %v2013_v25 = vcombine.low %v300_v10, %v304_v11  ;;  %v2019_v29 = vcombine.low %v307_v14, %v311_v15  ;;  %v238_v14 = vld [vmem:[#allocation7 + $0x18] sm:$0xff] }
  0x64   :  { %1052 = vmatpush1.bf16.msra.mxu0 %v1971_v42  ;;  %1093 = vmatpush1.bf16.msra.mxu1 %v1973_v46  ;;  %v312_v19 = vld [vmem:[#allocation7 + $0x268] sm:$0xff]  ;;  %v319_v23 = vld [vmem:[#allocation7 + $0x2a0] sm:$0xff] }
  0x65   :  { %1053 = vmatprep.subr.bf16.mxu0 %v1980_v45  ;;  %1094 = vmatprep.subr.bf16.mxu1 %v1982_v49  ;;  %v316_v26 = vld [vmem:[#allocation7 + $0x288] sm:$0xff]  ;;  %v2022_v28 = vcombine.high %v308_v18, %v312_v19  ;;  %v323_v30 = vld [vmem:[#allocation7 + $0x2c0] sm:$0xff]  ;;  %v2028_v32 = vcombine.high %v315_v22, %v319_v23  ;;  %v2021_v33 = vcombine.low %v308_v18, %v312_v19 }
  0x66   :  { %v320_v27 = vld [vmem:[#allocation7 + $0x2a8] sm:$0xff]  ;;  %v327_v31 = vld [vmem:[#allocation7 + $0x2e0] sm:$0xff]  ;;  %v2027_v37 = vcombine.low %v315_v22, %v319_v23 }
  0x67   :  { %v324_v34 = vld [vmem:[#allocation7 + $0x2c8] sm:$0xff]  ;;  %v2030_v36 = vcombine.high %v316_v26, %v320_v27  ;;  %v331_v38 = vld [vmem:[#allocation7 + $0x300] sm:$0xff]  ;;  %v2036_v40 = vcombine.high %v323_v30, %v327_v31  ;;  %v2029_v41 = vcombine.low %v316_v26, %v320_v27  ;;  %v2035_v45 = vcombine.low %v323_v30, %v327_v31 }
  0x68   :  { %1054 = vmatpush1.bf16.msra.mxu0 %v1979_v51  ;;  %1095 = vmatpush1.bf16.msra.mxu1 %v1981_v56  ;;  %v328_v35 = vld [vmem:[#allocation7 + $0x2e8] sm:$0xff]  ;;  %v335_v39 = vld [vmem:[#allocation7 + $0x320] sm:$0xff] }
  0x69   :  { %1055 = vmatprep.subr.bf16.mxu0 %v1988_v55  ;;  %1096 = vmatprep.subr.bf16.mxu1 %v1990_v59  ;;  %v332_v42 = vld [vmem:[#allocation7 + $0x308] sm:$0xff]  ;;  %v2038_v44 = vcombine.high %v324_v34, %v328_v35  ;;  %v339_v46 = vld [vmem:[#allocation7 + $0x340] sm:$0xff]  ;;  %v2044_v48 = vcombine.high %v331_v38, %v335_v39  ;;  %v2037_v49 = vcombine.low %v324_v34, %v328_v35 }
  0x6a   :  { %v336_v43 = vld [vmem:[#allocation7 + $0x328] sm:$0xff]  ;;  %v343_v47 = vld [vmem:[#allocation7 + $0x360] sm:$0xff]  ;;  %v2043_v53 = vcombine.low %v331_v38, %v335_v39  ;;  %v249_v39 = vld [vmem:[#allocation7 + $0x70] sm:$0xff] }
  0x6b   :  { %v340_v50 = vld [vmem:[#allocation7 + $0x348] sm:$0xff]  ;;  %v2046_v52 = vcombine.high %v332_v42, %v336_v43  ;;  %v2052_v54 = vcombine.high %v339_v46, %v343_v47  ;;  %v2045_v55 = vcombine.low %v332_v42, %v336_v43  ;;  %v2051_v57 = vcombine.low %v339_v46, %v343_v47  ;;  %v347_v59 = vld [vmem:[#allocation7 + $0x380] sm:$0xff] }
  0x6c   :  { %1056 = vmatpush1.bf16.msra.mxu0 %v1987_v60  ;;  %1097 = vmatpush1.bf16.msra.mxu1 %v1989_v0  ;;  %v344_v51 = vld [vmem:[#allocation7 + $0x368] sm:$0xff]  ;;  %v351_v60 = vld [vmem:[#allocation7 + $0x3a0] sm:$0xff] }
  0x6d   :  { %1057 = vmatprep.subr.bf16.mxu0 %v1996_v63  ;;  %1098 = vmatprep.subr.bf16.mxu1 %v1998_v4  ;;  %v2054_v56 = vcombine.high %v340_v50, %v344_v51  ;;  %v2053_v58 = vcombine.low %v340_v50, %v344_v51  ;;  %v348_v61 = vld [vmem:[#allocation7 + $0x388] sm:$0xff]  ;;  %v2060_v62 = vcombine.high %v347_v59, %v351_v60  ;;  %v355_v4 = vld [vmem:[#allocation7 + $0x3c0] sm:$0xff]  ;;  %v258_v50 = vld [vmem:[#allocation7 + $0xb8] sm:$0xff] }
  0x6e   :  { %v352_v63 = vld [vmem:[#allocation7 + $0x3a8] sm:$0xff]  ;;  %v2059_v0 = vcombine.low %v347_v59, %v351_v60 }
  0x6f   :  { %v2061_v2 = vcombine.low %v348_v61, %v352_v63  ;;  %v2062_v3 = vcombine.high %v348_v61, %v352_v63  ;;  %v356_v6 = vld [vmem:[#allocation7 + $0x3c8] sm:$0xff]  ;;  %v269_v63 = vld [vmem:[#allocation7 + $0x110] sm:$0xff] }
  0x70   :  { %1058 = vmatpush1.bf16.msra.mxu0 %v1995_v5  ;;  %1099 = vmatpush1.bf16.msra.mxu1 %v1997_v9  ;;  %v359_v5 = vld [vmem:[#allocation7 + $0x3e0] sm:$0xff]  ;;  %v2548_v23 = vld [vmem:[%s2615_s2] sm:$0x7] }
  0x71   :  { %1059 = vmatprep.subr.bf16.mxu0 %v2004_v8  ;;  %1100 = vmatprep.subr.bf16.mxu1 %v2006_v12  ;;  %v2068_v7 = vcombine.high %v355_v4, %v359_v5  ;;  %v360_v8 = vld [vmem:[#allocation7 + $0x3e8] sm:$0xff]  ;;  %v2067_v9 = vcombine.low %v355_v4, %v359_v5  ;;  %v237_v12 = vld [vmem:[#allocation7 + $0x10] sm:$0xff] }
  0x72   :  { %v2069_v10 = vcombine.low %v356_v6, %v360_v8  ;;  %v2070_v11 = vcombine.high %v356_v6, %v360_v8  ;;  %v277_v8 = vld [vmem:[#allocation7 + $0x150] sm:$0xff] }
  0x74   :  { %1060 = vmatpush1.bf16.msra.mxu0 %v2003_v13  ;;  %1101 = vmatpush1.bf16.msra.mxu1 %v2005_v17  ;;  %v241_v13 = vld [vmem:[#allocation7 + $0x30] sm:$0xff] }
  0x75   :  { %1061 = vmatprep.subr.bf16.mxu0 %v2012_v16  ;;  %1102 = vmatprep.subr.bf16.mxu1 %v2014_v20  ;;  %v1952_v15 = vcombine.high %v237_v12, %v241_v13  ;;  %v242_v16 = vld [vmem:[#allocation7 + $0x38] sm:$0xff]  ;;  %v1951_v17 = vcombine.low %v237_v12, %v241_v13  ;;  %v99_v20 = vlaneseq }
  0x76   :  { %v1953_v18 = vcombine.low %v238_v14, %v242_v16  ;;  %v1954_v19 = vcombine.high %v238_v14, %v242_v16  ;;  %v285_v16 = vld [vmem:[#allocation7 + $0x190] sm:$0xff] }
  0x78   :  { %1062 = vmatpush1.bf16.msra.mxu0 %v2011_v21  ;;  %1103 = vmatpush1.bf16.msra.mxu1 %v2013_v25  ;;  %v2542_v21 = vshrl.u32 %v99_v20, 7 }
  0x79   :  { %1063 = vmatprep.subr.bf16.mxu0 %v2020_v24  ;;  %1104 = vmatprep.subr.bf16.mxu1 %v2022_v28 }
  0x7a   :  { %v101_v22 = vsub.s32 0, %v2542_v21  ;;  %v105_v24 = vsub.s32 1, %v2542_v21 }
  0x7c   :  { %1064 = vmatpush1.bf16.msra.mxu0 %v2019_v29  ;;  %1105 = vmatpush1.bf16.msra.mxu1 %v2021_v33  ;;  %v102_v25 = vrot.slane %v2548_v23, %v101_v22  ;;  %v106_v26 = vrot.slane %v2548_v23, %v105_v24 }
  0x7d   :  { %1065 = vmatprep.subr.bf16.mxu0 %v2028_v32  ;;  %1106 = vmatprep.subr.bf16.mxu1 %v2030_v36 }
  0x80   :  { %1066 = vmatpush1.bf16.msra.mxu0 %v2027_v37  ;;  %1107 = vmatpush1.bf16.msra.mxu1 %v2029_v41  ;;  %v245_v37 = vld [vmem:[#allocation7 + $0x50] sm:$0xff]  ;;  %v250_v41 = vld [vmem:[#allocation7 + $0x78] sm:$0xff] }
  0x81   :  { %1067 = vmatprep.subr.bf16.mxu0 %v2036_v40  ;;  %1108 = vmatprep.subr.bf16.mxu1 %v2038_v44  ;;  %v246_v40 = vld [vmem:[#allocation7 + $0x58] sm:$0xff]  ;;  %v1960_v46 = vcombine.high %v245_v37, %v249_v39  ;;  %v1959_v51 = vcombine.low %v245_v37, %v249_v39  ;;  %v301_v37 = vld [vmem:[#allocation7 + $0x210] sm:$0xff] }
  0x82   :  { %v1962_v47 = vcombine.high %v246_v40, %v250_v41  ;;  %v302_v39 = vld [vmem:[#allocation7 + $0x218] sm:$0xff] }
  0x84   :  { %1068 = vmatpush1.bf16.msra.mxu0 %v2035_v45  ;;  %1109 = vmatpush1.bf16.msra.mxu1 %v2037_v49  ;;  %v253_v45 = vld [vmem:[#allocation7 + $0x90] sm:$0xff]  ;;  %v254_v49 = vld [vmem:[#allocation7 + $0x98] sm:$0xff] }
  0x85   :  { %1069 = vmatprep.subr.bf16.mxu0 %v2044_v48  ;;  %1110 = vmatprep.subr.bf16.mxu1 %v2046_v52  ;;  %v257_v48 = vld [vmem:[#allocation7 + $0xb0] sm:$0xff]  ;;  %v1961_v52 = vcombine.low %v246_v40, %v250_v41  ;;  %v1969_v60 = vcombine.low %v254_v49, %v258_v50  ;;  %v306_v40 = vld [vmem:[#allocation7 + $0x238] sm:$0xff] }
  0x86   :  { %v1967_v59 = vcombine.low %v253_v45, %v257_v48 }
  0x88   :  { %1070 = vmatpush1.bf16.msra.mxu0 %v2043_v53  ;;  %1111 = vmatpush1.bf16.msra.mxu1 %v2045_v55  ;;  %v1968_v53 = vcombine.high %v253_v45, %v257_v48  ;;  %v261_v55 = vld [vmem:[#allocation7 + $0xd0] sm:$0xff]  ;;  %v2018_v45 = vcombine.high %v302_v39, %v306_v40  ;;  %v310_v48 = vld [vmem:[#allocation7 + $0x258] sm:$0xff] }
  0x89   :  { %1071 = vmatprep.subr.bf16.mxu0 %v2052_v54  ;;  %1112 = vmatprep.subr.bf16.mxu1 %v2054_v56  ;;  %v1970_v54 = vcombine.high %v254_v49, %v258_v50  ;;  %v265_v56 = vld [vmem:[#allocation7 + $0xf0] sm:$0xff]  ;;  %v314_v49 = vld [vmem:[#allocation7 + $0x278] sm:$0xff] }
  0x8a   :  { %v1976_v61 = vcombine.high %v261_v55, %v265_v56  ;;  %v1975_v4 = vcombine.low %v261_v55, %v265_v56  ;;  %v321_v55 = vld [vmem:[#allocation7 + $0x2b0] sm:$0xff]  ;;  %v318_v56 = vld [vmem:[#allocation7 + $0x298] sm:$0xff] }
  0x8c   :  { %1072 = vmatpush1.bf16.msra.mxu0 %v2051_v57  ;;  %1113 = vmatpush1.bf16.msra.mxu1 %v2053_v58  ;;  %v262_v57 = vld [vmem:[#allocation7 + $0xd8] sm:$0xff] }
  0x8d   :  { %1073 = vmatprep.subr.bf16.mxu0 %v2060_v62  ;;  %1114 = vmatprep.subr.bf16.mxu1 %v2062_v3  ;;  %v266_v58 = vld [vmem:[#allocation7 + $0xf8] sm:$0xff] }
  0x8e   :  { %v1978_v62 = vcombine.high %v262_v57, %v266_v58  ;;  %v274_v3 = vld [vmem:[#allocation7 + $0x138] sm:$0xff]  ;;  %v1977_v5 = vcombine.low %v262_v57, %v266_v58 }
  0x8f   :  { %v322_v57 = vld [vmem:[#allocation7 + $0x2b8] sm:$0xff] }
  0x90   :  { %1074 = vmatpush1.bf16.msra.mxu0 %v2059_v0  ;;  %1115 = vmatpush1.bf16.msra.mxu1 %v2061_v2  ;;  %v273_v0 = vld [vmem:[#allocation7 + $0x130] sm:$0xff]  ;;  %v270_v2 = vld [vmem:[#allocation7 + $0x118] sm:$0xff] }
  0x91   :  { %1075 = vmatprep.subr.bf16.mxu0 %v2068_v7  ;;  %1116 = vmatprep.subr.bf16.mxu1 %v2070_v11  ;;  %v1984_v6 = vcombine.high %v269_v63, %v273_v0  ;;  %v1986_v7 = vcombine.high %v270_v2, %v274_v3  ;;  %v282_v11 = vld [vmem:[#allocation7 + $0x178] sm:$0xff]  ;;  %v1983_v12 = vcombine.low %v269_v63, %v273_v0  ;;  %v329_v63 = vld [vmem:[#allocation7 + $0x2f0] sm:$0xff] }
  0x92   :  { %v1985_v13 = vcombine.low %v270_v2, %v274_v3  ;;  %v326_v0 = vld [vmem:[#allocation7 + $0x2d8] sm:$0xff] }
  0x93   :  { %v330_v2 = vld [vmem:[#allocation7 + $0x2f8] sm:$0xff] }
  0x94   :  { %1076 = vmatpush1.bf16.msra.mxu0 %v2067_v9  ;;  %1117 = vmatpush1.bf16.msra.mxu1 %v2069_v10  ;;  %v281_v9 = vld [vmem:[#allocation7 + $0x170] sm:$0xff]  ;;  %v278_v10 = vld [vmem:[#allocation7 + $0x158] sm:$0xff] }
  0x95   :  { %1127 = vmatprep.subr.bf16.mxu0 %v1952_v15  ;;  %1168 = vmatprep.subr.bf16.mxu1 %v1954_v19  ;;  %v1992_v14 = vcombine.high %v277_v8, %v281_v9  ;;  %v1994_v15 = vcombine.high %v278_v10, %v282_v11  ;;  %v290_v19 = vld [vmem:[#allocation7 + $0x1b8] sm:$0xff]  ;;  %v1991_v20 = vcombine.low %v277_v8, %v281_v9  ;;  %v337_v8 = vld [vmem:[#allocation7 + $0x330] sm:$0xff] }
  0x96   :  { %v334_v9 = vld [vmem:[#allocation7 + $0x318] sm:$0xff] }
 0x12a   :  { %v184_v27 = vpop.f32.mrb[0].mxu0  ;;  %v2557_v32 = vpop.f32.mrb[0].mxu1 }
 0x12b   :  { %v185_v28 = vadd.f32 %v184_v27, %v102_v25  ;;  %v186_v29 = vpop.f32.mrb[1].mxu0  ;;  %v2240_v35 = vpop.f32.mrb[1].mxu1  ;;  %v1993_v25 = vcombine.low %v278_v10, %v282_v11  ;;  %v338_v10 = vld [vmem:[#allocation7 + $0x338] sm:$0xff] }
 0x12c   :  { %v187_v30 = vadd.f32 %v186_v29, %v106_v26  ;;  %v188_v31 = vpop.f32.mrb[2].mxu0  ;;  %v228_v38 = vpop.f32.mrb[2].mxu1  ;;  %v297_v29 = vld [vmem:[#allocation7 + $0x1f0] sm:$0xff] }
 0x12d   :  { %v231_v33 = vpack.c.bf16 %v185_v28, %v185_v28  ;;  %v189_v34 = vpop.f32.mrb[3].mxu0  ;;  %v2241_v42 = vpop.f32.mrb[3].mxu1  ;;  %v293_v28 = vld [vmem:[#allocation7 + $0x1d0] sm:$0xff]  ;;  %v298_v31 = vld [vmem:[#allocation7 + $0x1f8] sm:$0xff] }
 0x12e   :  { %v232_v36 = vpack.c.bf16 %v187_v30, %v187_v30  ;;  %v294_v30 = vld [vmem:[#allocation7 + $0x1d8] sm:$0xff]  ;;  %v2008_v35 = vcombine.high %v293_v28, %v297_v29  ;;  %v305_v38 = vld [vmem:[#allocation7 + $0x230] sm:$0xff]  ;;  %v2007_v41 = vcombine.low %v293_v28, %v297_v29 }
 0x12f   :  { %v2561_v44 = vmax.bf16 %v2435_v1, %v231_v33  ;;  %v2009_v42 = vcombine.low %v294_v30, %v298_v31  ;;  %v2015_v50 = vcombine.low %v301_v37, %v305_v38  ;;  %v353_v28 = vld [vmem:[#allocation7 + $0x3b0] sm:$0xff]  ;;  %v350_v29 = vld [vmem:[#allocation7 + $0x398] sm:$0xff] }
 0x130   :  { %v234_v43 = vmax.bf16 %v2435_v1, %v232_v36  ;;  %v2010_v36 = vcombine.high %v294_v30, %v298_v31  ;;  %v354_v30 = vld [vmem:[#allocation7 + $0x3b8] sm:$0xff] }
 0x132   :  { %1077 = vmatprep.mubr.bf16.mxu0 %v234_v43  ;;  %1118 = vmatprep.mubr.bf16.mxu1 %v234_v43 }
 0x133   :  { %1078 = vmatmul.mubr.bf16.vlgmr.msra.gmra.mrb[4].mxu0 %v2561_v44  ;;  %1119 = vmatmul.mubr.bf16.vlgmr.msra.gmra.mrb[4].mxu1 %v2561_v44 }
 0x134   :  { %1128 = vmatpush1.bf16.msra.mxu0 %v1951_v17  ;;  %1169 = vmatpush1.bf16.msra.mxu1 %v1953_v18  ;;  %v289_v17 = vld [vmem:[#allocation7 + $0x1b0] sm:$0xff]  ;;  %v286_v18 = vld [vmem:[#allocation7 + $0x198] sm:$0xff] }
 0x135   :  { %1159 = vmatprep.mubr.bf16.mxu0 %v234_v43  ;;  %1200 = vmatprep.mubr.bf16.mxu1 %v234_v43  ;;  %v2000_v26 = vcombine.high %v285_v16, %v289_v17  ;;  %v2002_v27 = vcombine.high %v286_v18, %v290_v19  ;;  %v1999_v33 = vcombine.low %v285_v16, %v289_v17  ;;  %v345_v16 = vld [vmem:[#allocation7 + $0x370] sm:$0xff]  ;;  %v342_v17 = vld [vmem:[#allocation7 + $0x358] sm:$0xff] }
 0x136   :  { %1129 = vmatprep.subr.bf16.mxu0 %v1960_v46  ;;  %1170 = vmatprep.subr.bf16.mxu1 %v1962_v47  ;;  %v2001_v34 = vcombine.low %v286_v18, %v290_v19  ;;  %v2016_v43 = vcombine.high %v301_v37, %v305_v38  ;;  %v309_v46 = vld [vmem:[#allocation7 + $0x250] sm:$0xff]  ;;  %v346_v18 = vld [vmem:[#allocation7 + $0x378] sm:$0xff] }
 0x137   :  { %v313_v47 = vld [vmem:[#allocation7 + $0x270] sm:$0xff]  ;;  %v358_v38 = vld [vmem:[#allocation7 + $0x3d8] sm:$0xff] }
 0x138   :  { %1130 = vmatpush1.bf16.msra.mxu0 %v1959_v51  ;;  %1171 = vmatpush1.bf16.msra.mxu1 %v1961_v52  ;;  %v2017_v51 = vcombine.low %v302_v39, %v306_v40  ;;  %v2024_v52 = vcombine.high %v309_v46, %v313_v47  ;;  %v2023_v58 = vcombine.low %v309_v46, %v313_v47  ;;  %v361_v37 = vld [vmem:[#allocation7 + $0x3f0] sm:$0xff]  ;;  %v362_v39 = vld [vmem:[#allocation7 + $0x3f8] sm:$0xff]  ;;  %v2263_v47 = vld [vmem:[#allocation8 + $0x40] sm:$0xff]  }
 0x139   :  { %1131 = vmatprep.subr.bf16.mxu0 %v1968_v53  ;;  %1172 = vmatprep.subr.bf16.mxu1 %v1970_v54  ;;  %v2026_v53 = vcombine.high %v310_v48, %v314_v49  ;;  %v317_v54 = vld [vmem:[#allocation7 + $0x290] sm:$0xff]  ;;  %v2073_v46 = vcombine.low %v358_v38, %v362_v39 }
 0x13a   :  { %v2031_v3 = vcombine.low %v317_v54, %v321_v55 }
 0x13c   :  { %1132 = vmatpush1.bf16.msra.mxu0 %v1967_v59  ;;  %1173 = vmatpush1.bf16.msra.mxu1 %v1969_v60  ;;  %v2025_v59 = vcombine.low %v310_v48, %v314_v49  ;;  %v2032_v60 = vcombine.high %v317_v54, %v321_v55  ;;  %v2264_v48 = vld [vmem:[#allocation8 + $0xc0] sm:$0xff]   ;;  %v2270_v54 = vld [vmem:[#allocation8 + $0x88] sm:$0xff]   ;;  %v2271_v55 = vld [vmem:[#allocation8 + $0x50] sm:$0xff]  }
 0x13d   :  { %1133 = vmatprep.subr.bf16.mxu0 %v1976_v61  ;;  %1174 = vmatprep.subr.bf16.mxu1 %v1978_v62  ;;  %v2034_v61 = vcombine.high %v318_v56, %v322_v57  ;;  %v325_v62 = vld [vmem:[#allocation7 + $0x2d0] sm:$0xff]  ;;  %v2265_v49 = vld [vmem:[#allocation8] sm:$0xff]  }
 0x13e   :  { %v2039_v11 = vcombine.low %v325_v62, %v329_v63 }
 0x140   :  { %1134 = vmatpush1.bf16.msra.mxu0 %v1975_v4  ;;  %1175 = vmatpush1.bf16.msra.mxu1 %v1977_v5  ;;  %v2033_v4 = vcombine.low %v318_v56, %v322_v57  ;;  %v2040_v5 = vcombine.high %v325_v62, %v329_v63  ;;  %v2272_v56 = vld [vmem:[#allocation8 + $0xd0] sm:$0xff]   ;;  %v2279_v62 = vld [vmem:[#allocation8 + $0x60] sm:$0xff]  }
 0x141   :  { %1135 = vmatprep.subr.bf16.mxu0 %v1984_v6  ;;  %1176 = vmatprep.subr.bf16.mxu1 %v1986_v7  ;;  %v2042_v6 = vcombine.high %v326_v0, %v330_v2  ;;  %v333_v7 = vld [vmem:[#allocation7 + $0x310] sm:$0xff]  ;;  %v2280_v63 = vld [vmem:[#allocation8 + $0xe0] sm:$0xff]  }
 0x142   :  { %v2047_v19 = vcombine.low %v333_v7, %v337_v8  ;;  %v2273_v57 = vld [vmem:[#allocation8 + $0x10] sm:$0xff]  }
 0x144   :  { %1136 = vmatpush1.bf16.msra.mxu0 %v1983_v12  ;;  %1177 = vmatpush1.bf16.msra.mxu1 %v1985_v13  ;;  %v2041_v12 = vcombine.low %v326_v0, %v330_v2  ;;  %v2048_v13 = vcombine.high %v333_v7, %v337_v8  ;;  %v2281_v0 = vld [vmem:[#allocation8 + $0x20] sm:$0xff]   ;;  %v2287_v7 = vld [vmem:[#allocation8 + $0x70] sm:$0xff]  }
 0x145   :  { %1137 = vmatprep.subr.bf16.mxu0 %v1992_v14  ;;  %1178 = vmatprep.subr.bf16.mxu1 %v1994_v15  ;;  %v2050_v14 = vcombine.high %v334_v9, %v338_v10  ;;  %v341_v15 = vld [vmem:[#allocation7 + $0x350] sm:$0xff]  ;;  %v2282_v2 = vld [vmem:[#allocation8 + $0xa0] sm:$0xff]  }
 0x146   :  { %v2055_v31 = vcombine.low %v341_v15, %v345_v16  ;;  %v2288_v8 = vld [vmem:[#allocation8 + $0xf0] sm:$0xff]  }
 0x148   :  { %1138 = vmatpush1.bf16.msra.mxu0 %v1991_v20  ;;  %1179 = vmatpush1.bf16.msra.mxu1 %v1993_v25  ;;  %v2049_v20 = vcombine.low %v334_v9, %v338_v10  ;;  %v2056_v25 = vcombine.high %v341_v15, %v345_v16  ;;  %v2289_v9 = vld [vmem:[#allocation8 + $0x30] sm:$0xff]   ;;  %v2295_v15 = vld [vmem:[#allocation8 + $0x140] sm:$0xff]  }
 0x149   :  { %1139 = vmatprep.subr.bf16.mxu0 %v2000_v26  ;;  %1180 = vmatprep.subr.bf16.mxu1 %v2002_v27  ;;  %v2058_v26 = vcombine.high %v342_v17, %v346_v18  ;;  %v349_v27 = vld [vmem:[#allocation7 + $0x390] sm:$0xff]  ;;  %v2296_v16 = vld [vmem:[#allocation8 + $0x1c0] sm:$0xff]  }
 0x14a   :  { %v2063_v40 = vcombine.low %v349_v27, %v353_v28  ;;  %v2290_v10 = vld [vmem:[#allocation8 + $0xb0] sm:$0xff]  }
 0x14c   :  { %1140 = vmatpush1.bf16.msra.mxu0 %v1999_v33  ;;  %1181 = vmatpush1.bf16.msra.mxu1 %v2001_v34  ;;  %v2057_v33 = vcombine.low %v342_v17, %v346_v18  ;;  %v2064_v34 = vcombine.high %v349_v27, %v353_v28  ;;  %v2570_v17 = vld [vmem:[%s2617_s4] sm:$0xff]  ;;  %v379_v18 = vsub.s32 3, %v2542_v21 }
 0x14d   :  { %1141 = vmatprep.subr.bf16.mxu0 %v2008_v35  ;;  %1182 = vmatprep.subr.bf16.mxu1 %v2010_v36  ;;  %v2066_v35 = vcombine.high %v350_v29, %v354_v30  ;;  %v357_v36 = vld [vmem:[#allocation7 + $0x3d0] sm:$0xff] }
 0x14e   :  { %v380_v27 = vrot.slane %v2570_v17, %v379_v18  ;;  %v395_v18 = vsub.s32 7, %v2542_v21 }
 0x150   :  { %1142 = vmatpush1.bf16.msra.mxu0 %v2007_v41  ;;  %1183 = vmatpush1.bf16.msra.mxu1 %v2009_v42  ;;  %v2065_v41 = vcombine.low %v350_v29, %v354_v30  ;;  %v2072_v42 = vcombine.high %v357_v36, %v361_v37 }
 0x151   :  { %1143 = vmatprep.subr.bf16.mxu0 %v2016_v43  ;;  %1184 = vmatprep.subr.bf16.mxu1 %v2018_v45  ;;  %v2074_v43 = vcombine.high %v358_v38, %v362_v39  ;;  %v2071_v45 = vcombine.low %v357_v36, %v361_v37 }
 0x154   :  { %1144 = vmatpush1.bf16.msra.mxu0 %v2015_v50  ;;  %1185 = vmatpush1.bf16.msra.mxu1 %v2017_v51  ;;  %v2266_v50 = vld [vmem:[#allocation8 + $0x80] sm:$0xff]   ;;  %v2267_v51 = vld [vmem:[#allocation8 + $0x48] sm:$0xff]  }
 0x155   :  { %1145 = vmatprep.subr.bf16.mxu0 %v2024_v52  ;;  %1186 = vmatprep.subr.bf16.mxu1 %v2026_v53  ;;  %v2268_v52 = vld [vmem:[#allocation8 + $0xc8] sm:$0xff]  }
 0x156   :  { %v2269_v53 = vld [vmem:[#allocation8 + $0x8] sm:$0xff]  }
 0x158   :  { %1146 = vmatpush1.bf16.msra.mxu0 %v2023_v58  ;;  %1187 = vmatpush1.bf16.msra.mxu1 %v2025_v59  ;;  %v2274_v58 = vld [vmem:[#allocation8 + $0x90] sm:$0xff]   ;;  %v2275_v59 = vld [vmem:[#allocation8 + $0x58] sm:$0xff]  }
 0x159   :  { %1147 = vmatprep.subr.bf16.mxu0 %v2032_v60  ;;  %1188 = vmatprep.subr.bf16.mxu1 %v2034_v61  ;;  %v2276_v60 = vld [vmem:[#allocation8 + $0xd8] sm:$0xff]  }
 0x15a   :  { %v2277_v61 = vld [vmem:[#allocation8 + $0x18] sm:$0xff]  }
 0x15c   :  { %1148 = vmatpush1.bf16.msra.mxu0 %v2031_v3  ;;  %1189 = vmatpush1.bf16.msra.mxu1 %v2033_v4  ;;  %v2283_v3 = vld [vmem:[#allocation8 + $0x68] sm:$0xff]  }
 0x15d   :  { %1149 = vmatprep.subr.bf16.mxu0 %v2040_v5  ;;  %1190 = vmatprep.subr.bf16.mxu1 %v2042_v6  ;;  %v2284_v4 = vld [vmem:[#allocation8 + $0xe8] sm:$0xff]  }
 0x15e   :  { %v2285_v5 = vld [vmem:[#allocation8 + $0x28] sm:$0xff]  }
 0x15f   :  { %v2286_v6 = vld [vmem:[#allocation8 + $0xa8] sm:$0xff]  }
 0x160   :  { %1150 = vmatpush1.bf16.msra.mxu0 %v2039_v11  ;;  %1191 = vmatpush1.bf16.msra.mxu1 %v2041_v12  ;;  %v2291_v11 = vld [vmem:[#allocation8 + $0x78] sm:$0xff]  }
 0x161   :  { %1151 = vmatprep.subr.bf16.mxu0 %v2048_v13  ;;  %1192 = vmatprep.subr.bf16.mxu1 %v2050_v14  ;;  %v2292_v12 = vld [vmem:[#allocation8 + $0xf8] sm:$0xff]  }
 0x162   :  { %v2293_v13 = vld [vmem:[#allocation8 + $0x38] sm:$0xff]  }
 0x163   :  { %v2294_v14 = vld [vmem:[#allocation8 + $0xb8] sm:$0xff]  }
 0x164   :  { %1152 = vmatpush1.bf16.msra.mxu0 %v2047_v19  ;;  %1193 = vmatpush1.bf16.msra.mxu1 %v2049_v20  ;;  %v109_v19 = vsub.s32 2, %v2542_v21  ;;  %v368_v20 = vrot.slane %v2570_v17, %v101_v22 }
 0x165   :  { %1153 = vmatprep.subr.bf16.mxu0 %v2056_v25  ;;  %1194 = vmatprep.subr.bf16.mxu1 %v2058_v26  ;;  %v372_v26 = vrot.slane %v2570_v17, %v105_v24 }
 0x166   :  { %v376_v25 = vrot.slane %v2570_v17, %v109_v19 }
 0x168   :  { %1154 = vmatpush1.bf16.msra.mxu0 %v2055_v31  ;;  %1195 = vmatpush1.bf16.msra.mxu1 %v2057_v33 }
 0x169   :  { %1155 = vmatprep.subr.bf16.mxu0 %v2064_v34  ;;  %1196 = vmatprep.subr.bf16.mxu1 %v2066_v35 }
 0x16c   :  { %1156 = vmatpush1.bf16.msra.mxu0 %v2063_v40  ;;  %1197 = vmatpush1.bf16.msra.mxu1 %v2065_v41 }
 0x16d   :  { %1157 = vmatprep.subr.bf16.mxu0 %v2072_v42  ;;  %1198 = vmatprep.subr.bf16.mxu1 %v2074_v43 }
 0x170   :  { %1158 = vmatpush1.bf16.msra.mxu0 %v2071_v45  ;;  %1199 = vmatpush1.bf16.msra.mxu1 %v2073_v46  ;;  %v2297_v46 = vld [vmem:[#allocation8 + $0x100] sm:$0xff]  }
 0x171   :  { %2146 = vmatprep.subr.bf16.mxu0 %v2263_v47  ;;  %2168 = vmatprep.subr.bf16.mxu1 %v2264_v48  ;;  %v2298_v47 = vld [vmem:[#allocation8 + $0x180] sm:$0xff]  }
 0x173   :  { %1160 = vmatmul.mubr.bf16.vlgmr.msra.gmra.mrb[8].mxu0 %v2561_v44  ;;  %1201 = vmatmul.mubr.bf16.vlgmr.msra.gmra.mrb[8].mxu1 %v2561_v44  ;;  %v2278_v44 = vld [vmem:[#allocation8 + $0x98] sm:$0xff]  }
 0x174   :  { %2147 = vmatpush3.bf16.msra.mxu0 %v2265_v49  ;;  %2169 = vmatpush3.bf16.msra.mxu1 %v2266_v50  ;;  %v2299_v50 = vld [vmem:[#allocation8 + $0x148] sm:$0xff]  }
 0x175   :  { %2148 = vmatprep.subr.bf16.mxu0 %v2267_v51  ;;  %2170 = vmatprep.subr.bf16.mxu1 %v2268_v52  ;;  %v2300_v51 = vld [vmem:[#allocation8 + $0x1c8] sm:$0xff]  }
 0x176   :  { %v2301_v52 = vld [vmem:[#allocation8 + $0x108] sm:$0xff]  }
 0x178   :  { %2149 = vmatpush3.bf16.msra.mxu0 %v2269_v53  ;;  %2171 = vmatpush3.bf16.msra.mxu1 %v2270_v54  ;;  %v2302_v53 = vld [vmem:[#allocation8 + $0x188] sm:$0xff]   ;;  %v2303_v54 = vld [vmem:[#allocation8 + $0x150] sm:$0xff]  }
 0x179   :  { %2150 = vmatprep.subr.bf16.mxu0 %v2271_v55  ;;  %2172 = vmatprep.subr.bf16.mxu1 %v2272_v56  ;;  %v2304_v55 = vld [vmem:[#allocation8 + $0x1d0] sm:$0xff]  }
 0x17a   :  { %v2305_v56 = vld [vmem:[#allocation8 + $0x110] sm:$0xff]  }
 0x17c   :  { %2151 = vmatpush3.bf16.msra.mxu0 %v2273_v57  ;;  %2173 = vmatpush3.bf16.msra.mxu1 %v2274_v58  ;;  %v2306_v57 = vld [vmem:[#allocation8 + $0x190] sm:$0xff]   ;;  %v2307_v58 = vld [vmem:[#allocation8 + $0x158] sm:$0xff]  }
 0x17d   :  { %2152 = vmatprep.subr.bf16.mxu0 %v2275_v59  ;;  %2174 = vmatprep.subr.bf16.mxu1 %v2276_v60  ;;  %v2308_v59 = vld [vmem:[#allocation8 + $0x1d8] sm:$0xff]  }
 0x17e   :  { %v2309_v60 = vld [vmem:[#allocation8 + $0x118] sm:$0xff]  }
 0x180   :  { %2153 = vmatpush3.bf16.msra.mxu0 %v2277_v61  ;;  %2175 = vmatpush3.bf16.msra.mxu1 %v2278_v44  ;;  %v2310_v61 = vld [vmem:[#allocation8 + $0x198] sm:$0xff]   ;;  %v2311_v44 = vld [vmem:[#allocation8 + $0x160] sm:$0xff]  }
 0x181   :  { %2154 = vmatprep.subr.bf16.mxu0 %v2279_v62  ;;  %2176 = vmatprep.subr.bf16.mxu1 %v2280_v63  ;;  %v2312_v62 = vld [vmem:[#allocation8 + $0x1e0] sm:$0xff]  }
 0x182   :  { %v2313_v63 = vld [vmem:[#allocation8 + $0x120] sm:$0xff]  }
 0x184   :  { %2155 = vmatpush3.bf16.msra.mxu0 %v2281_v0  ;;  %2177 = vmatpush3.bf16.msra.mxu1 %v2282_v2  ;;  %v2314_v0 = vld [vmem:[#allocation8 + $0x1a0] sm:$0xff]   ;;  %v2315_v2 = vld [vmem:[#allocation8 + $0x168] sm:$0xff]  }
 0x185   :  { %2156 = vmatprep.subr.bf16.mxu0 %v2283_v3  ;;  %2178 = vmatprep.subr.bf16.mxu1 %v2284_v4  ;;  %v2316_v3 = vld [vmem:[#allocation8 + $0x1e8] sm:$0xff]  }
 0x186   :  { %v2317_v4 = vld [vmem:[#allocation8 + $0x128] sm:$0xff]  }
 0x188   :  { %2157 = vmatpush3.bf16.msra.mxu0 %v2285_v5  ;;  %2179 = vmatpush3.bf16.msra.mxu1 %v2286_v6  ;;  %v2318_v5 = vld [vmem:[#allocation8 + $0x1a8] sm:$0xff]   ;;  %v2319_v6 = vld [vmem:[#allocation8 + $0x170] sm:$0xff]  }
 0x189   :  { %2158 = vmatprep.subr.bf16.mxu0 %v2287_v7  ;;  %2180 = vmatprep.subr.bf16.mxu1 %v2288_v8  ;;  %v2320_v7 = vld [vmem:[#allocation8 + $0x1f0] sm:$0xff]  }
 0x18a   :  { %v2321_v8 = vld [vmem:[#allocation8 + $0x130] sm:$0xff]  }
 0x18c   :  { %2159 = vmatpush3.bf16.msra.mxu0 %v2289_v9  ;;  %2181 = vmatpush3.bf16.msra.mxu1 %v2290_v10  ;;  %v2322_v9 = vld [vmem:[#allocation8 + $0x1b0] sm:$0xff]   ;;  %v2323_v10 = vld [vmem:[#allocation8 + $0x178] sm:$0xff]  }
 0x18d   :  { %2160 = vmatprep.subr.bf16.mxu0 %v2291_v11  ;;  %2182 = vmatprep.subr.bf16.mxu1 %v2292_v12  ;;  %v2324_v11 = vld [vmem:[#allocation8 + $0x1f8] sm:$0xff]  }
 0x18e   :  { %v2325_v12 = vld [vmem:[#allocation8 + $0x138] sm:$0xff]  }
 0x190   :  { %2161 = vmatpush3.bf16.msra.mxu0 %v2293_v13  ;;  %2183 = vmatpush3.bf16.msra.mxu1 %v2294_v14  ;;  %v2326_v13 = vld [vmem:[#allocation8 + $0x1b8] sm:$0xff]   ;;  %v383_v14 = vsub.s32 4, %v2542_v21 }
 0x191   :  { %2190 = vmatprep.subr.bf16.mxu0 %v2295_v15  ;;  %2212 = vmatprep.subr.bf16.mxu1 %v2296_v16  ;;  %v391_v15 = vsub.s32 6, %v2542_v21  ;;  %v387_v16 = vsub.s32 5, %v2542_v21  ;;  %v2142_v21 = vld [vmem:[#allocation2] ss:$0 sm:$0xff] }
 0x206   :  { %v1079_v28 = vpop.f32.mrb[4].mxu0  ;;  %v1120_v29 = vpop.f32.mrb[4].mxu1 }
 0x207   :  { %v1080_v30 = vadd.f32 %v1079_v28, %v368_v20  ;;  %v1121_v31 = vadd.f32 %v1120_v29, %v376_v25  ;;  %v1081_v33 = vpop.f32.mrb[5].mxu0  ;;  %v1122_v34 = vpop.f32.mrb[5].mxu1  ;;  %v384_v20 = vrot.slane %v2570_v17, %v383_v14  ;;  %v392_v25 = vrot.slane %v2570_v17, %v391_v15  ;;  %v2141_v14 = vld [vmem:[%s2620_s7] ss:$0 sm:$0xff] }
 0x208   :  { %v1082_v35 = vadd.f32 %v1081_v33, %v372_v26  ;;  %v1123_v36 = vadd.f32 %v1122_v34, %v380_v27  ;;  %v1083_v37 = vpop.f32.mrb[6].mxu0  ;;  %v1124_v22 = vpop.f32.mrb[6].mxu1  ;;  %v388_v26 = vrot.slane %v2570_v17, %v387_v16  ;;  %v396_v27 = vrot.slane %v2570_v17, %v395_v18 }
 0x209   :  { %v1209_v38 = vpack.c.bf16 %v1080_v30, %v1080_v30  ;;  %v1211_v39 = vpack.c.bf16 %v1121_v31, %v1121_v31  ;;  %v1084_v40 = vpop.f32.mrb[7].mxu0  ;;  %v1125_v41 = vpop.f32.mrb[7].mxu1 }
 0x20a   :  { %v1210_v42 = vpack.c.bf16 %v1082_v35, %v1082_v35  ;;  %v1212_v43 = vpack.c.bf16 %v1123_v36, %v1123_v36 }
 0x20b   :  { %v1217_v48 = vmax.bf16 %v2435_v1, %v1209_v38  ;;  %v1219_v49 = vmax.bf16 %v2435_v1, %v1211_v39 }
 0x20c   :  { %v1218_v24 = vmax.bf16 %v2435_v1, %v1210_v42  ;;  %v1220_v45 = vmax.bf16 %v2435_v1, %v1212_v43 }
 0x20e   :  { %1776 = vmatprep.mubr.bf16.mxu0 %v1218_v24  ;;  %1816 = vmatprep.mubr.bf16.mxu1 %v1220_v45 }
 0x20f   :  { %1777 = vmatmul.mubr.bf16.vlgmr.msra.gmra.mrb[12].mxu0 %v1217_v48  ;;  %1817 = vmatmul.mubr.bf16.vlgmr.msra.gmra.mrb[12].mxu1 %v1219_v49  ;;  %v2075_v49 = vld [vmem:[%s2619_s6] ss:$0 sm:$0xff] }
 0x210   :  { %2191 = vmatpush3.bf16.msra.mxu0 %v2297_v46  ;;  %2213 = vmatpush3.bf16.msra.mxu1 %v2298_v47 }
 0x211   :  { %2192 = vmatprep.subr.bf16.mxu0 %v2299_v50  ;;  %2214 = vmatprep.subr.bf16.mxu1 %v2300_v51 }
 0x214   :  { %2193 = vmatpush3.bf16.msra.mxu0 %v2301_v52  ;;  %2215 = vmatpush3.bf16.msra.mxu1 %v2302_v53 }
 0x215   :  { %2194 = vmatprep.subr.bf16.mxu0 %v2303_v54  ;;  %2216 = vmatprep.subr.bf16.mxu1 %v2304_v55 }
 0x218   :  { %2195 = vmatpush3.bf16.msra.mxu0 %v2305_v56  ;;  %2217 = vmatpush3.bf16.msra.mxu1 %v2306_v57 }
 0x219   :  { %2196 = vmatprep.subr.bf16.mxu0 %v2307_v58  ;;  %2218 = vmatprep.subr.bf16.mxu1 %v2308_v59 }
 0x21c   :  { %2197 = vmatpush3.bf16.msra.mxu0 %v2309_v60  ;;  %2219 = vmatpush3.bf16.msra.mxu1 %v2310_v61 }
 0x21d   :  { %2198 = vmatprep.subr.bf16.mxu0 %v2311_v44  ;;  %2220 = vmatprep.subr.bf16.mxu1 %v2312_v62 }
 0x220   :  { %2199 = vmatpush3.bf16.msra.mxu0 %v2313_v63  ;;  %2221 = vmatpush3.bf16.msra.mxu1 %v2314_v0 }
 0x221   :  { %2200 = vmatprep.subr.bf16.mxu0 %v2315_v2  ;;  %2222 = vmatprep.subr.bf16.mxu1 %v2316_v3 }
 0x224   :  { %2201 = vmatpush3.bf16.msra.mxu0 %v2317_v4  ;;  %2223 = vmatpush3.bf16.msra.mxu1 %v2318_v5  ;;  %v110_v5 = vrot.slane %v2548_v23, %v109_v19 }
 0x225   :  { %2202 = vmatprep.subr.bf16.mxu0 %v2319_v6  ;;  %2224 = vmatprep.subr.bf16.mxu1 %v2320_v7 }
 0x228   :  { %2203 = vmatpush3.bf16.msra.mxu0 %v2321_v8  ;;  %2225 = vmatpush3.bf16.msra.mxu1 %v2322_v9  ;;  %v226_v8 = vadd.f32 %v2557_v32, %v110_v5 }
 0x229   :  { %2204 = vmatprep.subr.bf16.mxu0 %v2323_v10  ;;  %2226 = vmatprep.subr.bf16.mxu1 %v2324_v11 }
 0x22c   :  { %2205 = vmatpush3.bf16.msra.mxu0 %v2325_v12  ;;  %2227 = vmatpush3.bf16.msra.mxu1 %v2326_v13 }
 0x246   :  { %v1161_v28 = vpop.f32.mrb[8].mxu0  ;;  %v1202_v29 = vpop.f32.mrb[8].mxu1 }
 0x247   :  { %v1162_v30 = vadd.f32 %v1161_v28, %v384_v20  ;;  %v1203_v31 = vadd.f32 %v1202_v29, %v392_v25  ;;  %v1163_v33 = vpop.f32.mrb[9].mxu0  ;;  %v1204_v34 = vpop.f32.mrb[9].mxu1 }
 0x248   :  { %v1164_v35 = vadd.f32 %v1163_v33, %v388_v26  ;;  %v1205_v36 = vadd.f32 %v1204_v34, %v396_v27  ;;  %v1165_v37 = vpop.f32.mrb[10].mxu0  ;;  %v1206_v22 = vpop.f32.mrb[10].mxu1 }
 0x249   :  { %v1213_v38 = vpack.c.bf16 %v1162_v30, %v1162_v30  ;;  %v1215_v39 = vpack.c.bf16 %v1203_v31, %v1203_v31  ;;  %v1166_v40 = vpop.f32.mrb[11].mxu0  ;;  %v1207_v41 = vpop.f32.mrb[11].mxu1 }
 0x24a   :  { %v1214_v42 = vpack.c.bf16 %v1164_v35, %v1164_v35  ;;  %v1216_v43 = vpack.c.bf16 %v1205_v36, %v1205_v36 }
 0x24b   :  { %v1221_v45 = vmax.bf16 %v2435_v1, %v1213_v38  ;;  %v1223_v46 = vmax.bf16 %v2435_v1, %v1215_v39 }
 0x24c   :  { %v1222_v24 = vmax.bf16 %v2435_v1, %v1214_v42  ;;  %v1224_v17 = vmax.bf16 %v2435_v1, %v1216_v43 }
 0x24e   :  { %1856 = vmatprep.mubr.bf16.mxu0 %v1222_v24  ;;  %1896 = vmatprep.mubr.bf16.mxu1 %v1224_v17 }
 0x24f   :  { %1857 = vmatmul.mubr.bf16.vlgmr.msra.gmra.mrb[16].mxu0 %v1221_v45  ;;  %1897 = vmatmul.mubr.bf16.vlgmr.msra.gmra.mrb[16].mxu1 %v1223_v46 }
 0x2e2   :  { %v2162_v47 = vpop.f32.mrb[12].mxu0  ;;  %v2184_v48 = vpop.f32.mrb[12].mxu1 }
 0x2e3   :  { %v2163_v50 = vpop.f32.mrb[13].mxu0  ;;  %v2185_v51 = vpop.f32.mrb[13].mxu1 }
 0x2e4   :  { %v2164_v52 = vadd.f32 %v2163_v50, %v2162_v47  ;;  %v2186_v53 = vadd.f32 %v2185_v51, %v2184_v48  ;;  %v2165_v54 = vpop.f32.mrb[14].mxu0  ;;  %v2187_v55 = vpop.f32.mrb[14].mxu1 }
 0x2e5   :  { %v2166_v56 = vpop.f32.mrb[15].mxu0  ;;  %v2188_v57 = vpop.f32.mrb[15].mxu1 }
 0x2e6   :  { %v1779_v58 = vadd.f32 %v2164_v52, %v2075_v49 }
 0x2e8   :  { %v1819_v1 = vadd.f32 %v2186_v53, %v1779_v58 }
 0x322   :  { %v2206_v59 = vpop.f32.mrb[16].mxu0  ;;  %v2228_v60 = vpop.f32.mrb[16].mxu1 }
 0x323   :  { %v2207_v61 = vpop.f32.mrb[17].mxu0  ;;  %v2229_v44 = vpop.f32.mrb[17].mxu1 }
 0x324   :  { %v2208_v62 = vadd.f32 %v2207_v61, %v2206_v59  ;;  %v2230_v63 = vadd.f32 %v2229_v44, %v2228_v60  ;;  %v2209_v0 = vpop.f32.mrb[18].mxu0  ;;  %v2231_v2 = vpop.f32.mrb[18].mxu1 }
 0x325   :  { %v2210_v3 = vpop.f32.mrb[19].mxu0  ;;  %v2232_v4 = vpop.f32.mrb[19].mxu1 }
 0x326   :  { %v1859_v6 = vadd.f32 %v2208_v62, %v1819_v1 }
 0x328   :  { %v1899_v7 = vadd.f32 %v2230_v63, %v1859_v6 }
 0x32a   :  { %v1904_v9 = vmax.f32 %v1899_v7, 0.0 }
 0x32c   :  { %v1905_v10 = vadd.f32 %v1904_v9, %v226_v8 }
 0x32e   :  { %v2140_v11 = vmul.f32 -1.442695, %v1905_v10 }
 0x330   :  { %2327 = vpow2.f32 %v2140_v11 }
 0x33a   :  { %v2328_v12 = vpop.eup %2327 }
 0x33b   :  { %v1909_v13 = vadd.f32 1.0, %v2328_v12 }
 0x33d   :  { %2329 = vrcp.f32 %v1909_v13 }
 0x347   :  { %v2330_v15 = vpop.eup %2329 }
 0x348   :  { %v1919_v16 = vmul.f32 %v2330_v15, %v2141_v14 }
 0x34a   :  { %1920 = vadd.xlane.f32.xlu0 %v1919_v16 }
 0x3d7   :  { %v1921_v23 = vpop.xlane.xlu0 %1920 }
 0x3d8   :  { %v1929_v19 = vadd.f32 %v2142_v21, %v1921_v23 }
 0x3da   :  { %1931 = vst.msk [vmem:[%s2622_s9] sm:$0xff] %vm1930_vm2, %v1929_v19 }
 0x3db   :  { %1936 = vsyncpa [#allocation4], 1 }
 0x3dc   :  { %1937 = vsyncpa [#allocation6], 1 }
 0x3dd   :  { %1938 = vsyncpa [#allocation9], 1 }

</bundles_post_ra>
